<compile_context>
chip_gen: v7x
topology: tpu7x:2x2x1
jax: 0.10.0
libtpu: 0.0.40
codegen_flags: <defaults>
</compile_context>

<pallas_src>
import functools

import jax
import jax.numpy as jnp
from jax.experimental import pallas as pl
from jax.experimental.pallas import tpu as pltpu


def _pick(dim, pref):
    """Largest MXU-friendly tile: `pref` if it divides `dim`, else the full dim.

    Preferences follow the v6e/v7x 256x256 MXU (use 128-multiples on v5e)."""
    if dim > pref and dim % pref == 0:
        return pref
    return dim


# ----------------------------------------------------------------------------
# Tiled dense matmul (+ optional fused activation)
# ----------------------------------------------------------------------------
def _matmul_kernel(x_ref, w_ref, b_ref, o_ref, acc_ref, *, activation):
    @pl.when(pl.program_id(2) == 0)
    def _():
        acc_ref[...] = jnp.zeros(acc_ref.shape, jnp.float32)

    acc_ref[...] += jnp.dot(x_ref[...], w_ref[...],
                            preferred_element_type=jnp.float32)

    @pl.when(pl.program_id(2) == pl.num_programs(2) - 1)
    def _():
        y = acc_ref[...] + b_ref[...]
        if activation == "relu":
            y = jnp.maximum(y, 0.0)
        elif activation == "softmax":
            # NOTE: requires the full N (vocab) per tile; large vocab would need
            # a two-pass / online softmax.
            y = y - jnp.max(y, axis=-1, keepdims=True)
            e = jnp.exp(y)
            y = e * pl.reciprocal(jnp.sum(e, axis=-1, keepdims=True), approx=True)
        o_ref[...] = y.astype(o_ref.dtype)


def linear(x, w, b, activation=None):
    """x: (..., K) @ w: (K, N) + b: (N,). bf16 operands, f32 accumulation."""
    lead, K = x.shape[:-1], x.shape[-1]
    N = w.shape[-1]
    x2 = x.reshape(-1, K).astype(jnp.bfloat16)
    w = w.astype(jnp.bfloat16)
    M = x2.shape[0]

    tm = _pick(M, 256)
    tk = _pick(K, 512)
    tn = N if activation == "softmax" else _pick(N, 256)
    grid = (M // tm, N // tn, K // tk)

    out = pl.pallas_call(
        functools.partial(_matmul_kernel, activation=activation),
        out_shape=jax.ShapeDtypeStruct((M, N), jnp.float32),
        grid=grid,
        in_specs=[
            pl.BlockSpec((tm, tk), lambda i, j, k: (i, k)),
            pl.BlockSpec((tk, tn), lambda i, j, k: (k, j)),
            pl.BlockSpec((1, tn), lambda i, j, k: (0, j)),
        ],
        out_specs=pl.BlockSpec((tm, tn), lambda i, j, k: (i, j)),
        scratch_shapes=[pltpu.VMEM((tm, tn), jnp.float32)],
        compiler_params=pltpu.CompilerParams(
            dimension_semantics=("parallel", "parallel", "arbitrary")),
        cost_estimate=pl.CostEstimate(
            flops=2 * M * N * K,
            transcendentals=(M * N if activation == "softmax" else 0),
            bytes_accessed=2 * (M * K + K * N) + 4 * (M * N + N)),
    )(x2, w, b.reshape(1, N).astype(jnp.float32))
    return out.reshape(*lead, N)


# ----------------------------------------------------------------------------
# Fused residual-add + LayerNorm (row-tiled)
# ----------------------------------------------------------------------------
def _add_ln_kernel(x_ref, a_ref, g_ref, b_ref, o_ref):
    x = x_ref[...] + a_ref[...]
    mu = jnp.mean(x, axis=-1, keepdims=True)
    var = jnp.mean(jnp.square(x - mu), axis=-1, keepdims=True)
    y = (x - mu) * jax.lax.rsqrt(var + 1e-5)
    o_ref[...] = (y * g_ref[...] + b_ref[...]).astype(o_ref.dtype)


def add_layer_norm(x, a, gamma, beta):
    """LayerNorm(x + a) — residual add fused into the kernel, rows tiled."""
    lead, D = x.shape[:-1], x.shape[-1]
    x2 = x.reshape(-1, D)
    a2 = a.reshape(-1, D)
    M = x2.shape[0]
    tm = _pick(M, 256)
    out = pl.pallas_call(
        _add_ln_kernel,
        out_shape=jax.ShapeDtypeStruct((M, D), jnp.float32),
        grid=(M // tm,),
        in_specs=[
            pl.BlockSpec((tm, D), lambda i: (i, 0)),
            pl.BlockSpec((tm, D), lambda i: (i, 0)),
            pl.BlockSpec((1, D), lambda i: (0, 0)),
            pl.BlockSpec((1, D), lambda i: (0, 0)),
        ],
        out_specs=pl.BlockSpec((tm, D), lambda i: (i, 0)),
        compiler_params=pltpu.CompilerParams(dimension_semantics=("parallel",)),
    )(x2, a2, gamma.reshape(1, D), beta.reshape(1, D))
    return out.reshape(*lead, D)


# ----------------------------------------------------------------------------
# Fused FFN: relu(x @ w1 + b1) @ w2 + b2 (intermediate never hits HBM)
# ----------------------------------------------------------------------------
def _ffn_kernel(x_ref, w1_ref, b1_ref, w2_ref, b2_ref, o_ref):
    h = jnp.dot(x_ref[...], w1_ref[...],
                preferred_element_type=jnp.float32) + b1_ref[...]
    h = jnp.maximum(h, 0.0)
    y = jnp.dot(h.astype(w2_ref.dtype), w2_ref[...],
                preferred_element_type=jnp.float32) + b2_ref[...]
    o_ref[...] = y.astype(o_ref.dtype)


def feed_forward(x, p):
    lead, D = x.shape[:-1], x.shape[-1]
    dff = p["w1"].shape[-1]
    x2 = x.reshape(-1, D).astype(jnp.bfloat16)
    M = x2.shape[0]
    tm = _pick(M, 256)
    out = pl.pallas_call(
        _ffn_kernel,
        out_shape=jax.ShapeDtypeStruct((M, D), jnp.float32),
        grid=(M // tm,),
        in_specs=[
            pl.BlockSpec((tm, D), lambda i: (i, 0)),
            pl.BlockSpec((D, dff), lambda i: (0, 0)),
            pl.BlockSpec((1, dff), lambda i: (0, 0)),
            pl.BlockSpec((dff, D), lambda i: (0, 0)),
            pl.BlockSpec((1, D), lambda i: (0, 0)),
        ],
        out_specs=pl.BlockSpec((tm, D), lambda i: (i, 0)),
        compiler_params=pltpu.CompilerParams(dimension_semantics=("parallel",)),
        cost_estimate=pl.CostEstimate(
            flops=4 * M * D * dff, transcendentals=0,
            bytes_accessed=2 * (M * D + 2 * D * dff) + 4 * M * D),
    )(x2, p["w1"].astype(jnp.bfloat16), p["b1"].reshape(1, dff),
      p["w2"].astype(jnp.bfloat16), p["b2"].reshape(1, D))
    return out.reshape(*lead, D)


# ----------------------------------------------------------------------------
# Flash-style multi-head attention: grid (batch, Sq_tiles, Sk_tiles)
# ----------------------------------------------------------------------------
def _flash_attn_kernel(q_ref, k_ref, v_ref, o_ref, acc_ref, m_ref, l_ref,
                       *, num_heads, causal, scale, dh, tq, blk_k):
    qi = pl.program_id(1)
    kv_i = pl.program_id(2)

    @pl.when(kv_i == 0)
    def _init():
        acc_ref[...] = jnp.zeros(acc_ref.shape, jnp.float32)
        m_ref[...] = jnp.full(m_ref.shape, -1e30, jnp.float32)
        l_ref[...] = jnp.zeros(l_ref.shape, jnp.float32)

    def _compute():
        q = q_ref[0]          # (tq, D) bf16
        k = k_ref[0]          # (blk_k, D) bf16
        v = v_ref[0]          # (blk_k, D) bf16

        if causal:
            row = qi * tq + jax.lax.broadcasted_iota(jnp.int32, (tq, blk_k), 0)
            col = kv_i * blk_k + jax.lax.broadcasted_iota(jnp.int32, (tq, blk_k), 1)
            keep = col <= row

        for h in range(num_heads):
            hs = slice(h * dh, (h + 1) * dh)
            # QK^T via dot_general contracting on the last axes (no K transpose).
            s = jax.lax.dot_general(
                q[:, hs], k[:, hs],
                dimension_numbers=(((1,), (1,)), ((), ())),
                preferred_element_type=jnp.float32) * scale        # (tq, blk_k) f32
            if causal:
                s = jnp.where(keep, s, -1e30)
            m_prev = m_ref[h]                                      # (tq, 1)
            m_new = jnp.maximum(m_prev, jnp.max(s, axis=-1, keepdims=True))
            alpha = jnp.exp(m_prev - m_new)
            p = jnp.exp(s - m_new)
            l_ref[h] = alpha * l_ref[h] + jnp.sum(p, axis=-1, keepdims=True)
            pv = jnp.dot(p.astype(v.dtype), v[:, hs],
                         preferred_element_type=jnp.float32)       # (tq, dh)
            acc_ref[:, hs] = alpha * acc_ref[:, hs] + pv
            m_ref[h] = m_new

    if causal:
        # Skip key blocks fully above the diagonal for this query tile.
        pl.when(kv_i * blk_k <= qi * tq + (tq - 1))(_compute)
    else:
        _compute()

    @pl.when(kv_i == pl.num_programs(2) - 1)
    def _finalize():
        acc = acc_ref[...]
        inv = pl.reciprocal(l_ref[...], approx=True)               # (H, tq, 1)
        parts = [acc[:, h * dh:(h + 1) * dh] * inv[h] for h in range(num_heads)]
        o_ref[0] = jnp.concatenate(parts, axis=-1).astype(o_ref.dtype)


def attention_core(q, k, v, num_heads, causal):
    """q: (B, Sq, D), k/v: (B, Sk, D) -> (B, Sq, D). All heads per grid step."""
    B, Sq, D = q.shape
    Sk = k.shape[1]
    Dh = D // num_heads
    scale = 1.0 / float(Dh) ** 0.5
    tq = _pick(Sq, 256)
    blk_k = _pick(Sk, 256)
    n_sq = Sq // tq
    n_sk = Sk // blk_k

    kernel = functools.partial(_flash_attn_kernel, num_heads=num_heads,
                               causal=causal, scale=scale, dh=Dh, tq=tq,
                               blk_k=blk_k)
    return pl.pallas_call(
        kernel,
        out_shape=jax.ShapeDtypeStruct((B, Sq, D), jnp.float32),
        grid=(B, n_sq, n_sk),
        in_specs=[
            pl.BlockSpec((1, tq, D), lambda b, i, s: (b, i, 0)),
            pl.BlockSpec((1, blk_k, D), lambda b, i, s: (b, s, 0)),
            pl.BlockSpec((1, blk_k, D), lambda b, i, s: (b, s, 0)),
        ],
        out_specs=pl.BlockSpec((1, tq, D), lambda b, i, s: (b, i, 0)),
        scratch_shapes=[
            pltpu.VMEM((tq, D), jnp.float32),              # acc
            pltpu.VMEM((num_heads, tq, 1), jnp.float32),   # running max m
            pltpu.VMEM((num_heads, tq, 1), jnp.float32),   # running sum l
        ],
        compiler_params=pltpu.CompilerParams(
            dimension_semantics=("parallel", "parallel", "arbitrary")),
        cost_estimate=pl.CostEstimate(
            flops=4 * B * Sq * Sk * D,
            transcendentals=B * num_heads * Sq * Sk,
            bytes_accessed=2 * (B * Sq * D + 2 * B * Sk * D) + 4 * B * Sq * D),
    )(q, k, v)


# ----------------------------------------------------------------------------
# Model glue (plain JAX: parameter plumbing, cheap last-dim slices)
# ----------------------------------------------------------------------------
def self_attention(x, p, num_heads, causal):
    D = x.shape[-1]
    qkv = linear(x, p["w_qkv"], p["b_qkv"])            # fused QKV projection
    q = qkv[..., :D].astype(jnp.bfloat16)
    k = qkv[..., D:2 * D].astype(jnp.bfloat16)
    v = qkv[..., 2 * D:].astype(jnp.bfloat16)
    o = attention_core(q, k, v, num_heads, causal)
    return linear(o, p["wo"], p["bo"])


def cross_attention(x_q, x_kv, p, num_heads):
    D = x_q.shape[-1]
    q = linear(x_q, p["wq"], p["bq"]).astype(jnp.bfloat16)
    kv = linear(x_kv, p["w_kv"], p["b_kv"])            # fused KV projection
    k = kv[..., :D].astype(jnp.bfloat16)
    v = kv[..., D:].astype(jnp.bfloat16)
    o = attention_core(q, k, v, num_heads, causal=False)
    return linear(o, p["wo"], p["bo"])


def encoder_forward(x, layers, num_heads):
    for p in layers:
        a = self_attention(x, p["attn"], num_heads, causal=False)
        x = add_layer_norm(x, a, p["ln1_g"], p["ln1_b"])
        f = feed_forward(x, p["ffn"])
        x = add_layer_norm(x, f, p["ln2_g"], p["ln2_b"])
    return x


def decoder_forward(tokens, enc_out, dec_params, num_heads):
    x = dec_params["embed"][tokens]  # embedding gather (glue, plain JAX)
    # TODO(synk): positional encoding / sqrt(d_model) scale not in the provided snippet.
    for p in dec_params["layers"]:
        a = self_attention(x, p["self_attn"], num_heads, causal=True)
        x = add_layer_norm(x, a, p["ln1_g"], p["ln1_b"])
        c = cross_attention(x, enc_out, p["cross_attn"], num_heads)
        x = add_layer_norm(x, c, p["ln2_g"], p["ln2_b"])
        f = feed_forward(x, p["ffn"])
        x = add_layer_norm(x, f, p["ln3_g"], p["ln3_b"])
    return x


def transformer_forward(encoder_input, decoder_tokens, params, num_heads):
    enc_out = encoder_forward(encoder_input, params["encoder"], num_heads)
    dec_out = decoder_forward(decoder_tokens, enc_out, params["decoder"], num_heads)
    # head: Linear(d_model -> vocab) + Softmax(dim=-1), fused in one kernel
    return linear(dec_out, params["head_w"], params["head_b"], activation="softmax")


# ----------------------------------------------------------------------------
# Deterministic parameter init (matmul weights stored bf16, biases/LN f32)
# ----------------------------------------------------------------------------
def _lin_w(key, fan_in, fan_out):
    w = jax.random.normal(key, (fan_in, fan_out), jnp.float32) / jnp.sqrt(float(fan_in))
    return w.astype(jnp.bfloat16)


def _self_attn_init(key, d):
    k1, k2 = jax.random.split(key)
    return {"w_qkv": _lin_w(k1, d, 3 * d), "b_qkv": jnp.zeros((3 * d,), jnp.float32),
            "wo": _lin_w(k2, d, d), "bo": jnp.zeros((d,), jnp.float32)}


def _cross_attn_init(key, d):
    k1, k2, k3 = jax.random.split(key, 3)
    return {"wq": _lin_w(k1, d, d), "bq": jnp.zeros((d,), jnp.float32),
            "w_kv": _lin_w(k2, d, 2 * d), "b_kv": jnp.zeros((2 * d,), jnp.float32),
            "wo": _lin_w(k3, d, d), "bo": jnp.zeros((d,), jnp.float32)}


def _ffn_init(key, d, dff):
    k1, k2 = jax.random.split(key)
    return {"w1": _lin_w(k1, d, dff), "b1": jnp.zeros((dff,), jnp.float32),
            "w2": _lin_w(k2, dff, d), "b2": jnp.zeros((d,), jnp.float32)}


def init_params(key, d_model, N, vocab_len, d_ff):
    keys = jax.random.split(key, 4)
    ones = jnp.ones((d_model,), jnp.float32)
    zeros = jnp.zeros((d_model,), jnp.float32)

    enc_layers = []
    for k in jax.random.split(keys[0], N):
        ka, kf = jax.random.split(k)
        enc_layers.append({
            "attn": _self_attn_init(ka, d_model),
            "ln1_g": ones, "ln1_b": zeros,
            "ffn": _ffn_init(kf, d_model, d_ff),
            "ln2_g": ones, "ln2_b": zeros,
        })

    dec_layers = []
    for k in jax.random.split(keys[1], N):
        ks_, kc, kf = jax.random.split(k, 3)
        dec_layers.append({
            "self_attn": _self_attn_init(ks_, d_model),
            "ln1_g": ones, "ln1_b": zeros,
            "cross_attn": _cross_attn_init(kc, d_model),
            "ln2_g": ones, "ln2_b": zeros,
            "ffn": _ffn_init(kf, d_model, d_ff),
            "ln3_g": ones, "ln3_b": zeros,
        })

    embed = jax.random.normal(keys[2], (vocab_len, d_model), jnp.float32) * 0.02
    head_w = _lin_w(keys[3], d_model, vocab_len)
    head_b = jnp.zeros((vocab_len,), jnp.float32)

    return {
        "encoder": enc_layers,
        "decoder": {"embed": embed, "layers": dec_layers},
        "head_w": head_w,
        "head_b": head_b,
    }


# ----------------------------------------------------------------------------
if __name__ == "__main__":
    d_model, N, vocab_len, num_heads = 32, 2, 16, 2
    d_ff = 4 * d_model
    B, S_enc, S_dec = 2, 8, 8

    root = jax.random.PRNGKey(0)
    k_par, k_enc, k_dec = jax.random.split(root, 3)

    params = init_params(k_par, d_model, N, vocab_len, d_ff)
    encoder_input = jax.random.normal(k_enc, (B, S_enc, d_model), jnp.float32)
    decoder_tokens = jax.random.randint(k_dec, (B, S_dec), 0, vocab_len)

    out = transformer_forward(encoder_input, decoder_tokens, params, num_heads)
    out = jax.block_until_ready(out)

    assert out.shape == (B, S_dec, vocab_len), out.shape
    assert bool(jnp.all(jnp.isfinite(out)))
    # softmax rows must sum to ~1 (approx EUP reciprocal + bf16 matmuls -> loose tol)
    row_sums = jnp.sum(out, axis=-1)
    assert bool(jnp.all(jnp.abs(row_sums - 1.0) < 1e-2)), row_sums
    print("KERNEL_OK")
</pallas_src>

<mosaic_0001>
module attributes {stable_mosaic.version = 11 : i64} {
  func.func @_matmul_kernel(%arg0: i32, %arg1: i32, %arg2: i32, %arg3: memref<16x32xbf16, #tpu.memory_space<vmem>>, %arg4: memref<32x96xbf16, #tpu.memory_space<vmem>>, %arg5: memref<1x96xf32, #tpu.memory_space<vmem>>, %arg6: memref<16x96xf32, #tpu.memory_space<vmem>>, %arg7: memref<16x96xf32, #tpu.memory_space<vmem>>) attributes {dimension_semantics = [#tpu.dimension_semantics<parallel>, #tpu.dimension_semantics<parallel>, #tpu.dimension_semantics<arbitrary>], iteration_bounds = array<i64: 1, 1, 1>, scalar_prefetch = 0 : i64, scratch_operands = 1 : i64, tpu.core_type = #tpu.core_type<tc>, window_params = [{transform_indices = @transform_0, window_bounds = array<i64: 16, 32>}, {transform_indices = @transform_1, window_bounds = array<i64: 32, 96>}, {transform_indices = @transform_2, window_bounds = array<i64: 1, 96>}, {transform_indices = @transform_3, window_bounds = array<i64: 16, 96>}]} {
    %c0_i32 = arith.constant 0 : i32
    %0 = arith.cmpi eq, %arg2, %c0_i32 : i32
    %1 = arith.extui %0 : i1 to i32
    %c0_i32_0 = arith.constant 0 : i32
    %2 = arith.cmpi ne, %1, %c0_i32_0 : i32
    scf.if %2 {
      %cst_10 = arith.constant 0.000000e+00 : f32
      %12 = vector.broadcast %cst_10 : f32 to vector<16x96xf32>
      %c0_11 = arith.constant 0 : index
      %c0_12 = arith.constant 0 : index
      %13 = vector.load %arg7[%c0_11, %c0_12] : memref<16x96xf32, #tpu.memory_space<vmem>>, vector<16x96xf32>
      tpu.vector_store %arg7[%c0_11, %c0_12], %12 {strides = array<i32>} : memref<16x96xf32, #tpu.memory_space<vmem>>, vector<16x96xf32>,
    } else {
    }
    %c0 = arith.constant 0 : index
    %c0_1 = arith.constant 0 : index
    %3 = vector.load %arg7[%c0, %c0_1] : memref<16x96xf32, #tpu.memory_space<vmem>>, vector<16x96xf32>
    %c0_2 = arith.constant 0 : index
    %c0_3 = arith.constant 0 : index
    %4 = vector.load %arg3[%c0_2, %c0_3] : memref<16x32xbf16, #tpu.memory_space<vmem>>, vector<16x32xbf16>
    %c0_4 = arith.constant 0 : index
    %c0_5 = arith.constant 0 : index
    %5 = vector.load %arg4[%c0_4, %c0_5] : memref<32x96xbf16, #tpu.memory_space<vmem>>, vector<32x96xbf16>
    %cst = arith.constant dense<0.000000e+00> : vector<16x96xf32>
    %6 = tpu.matmul %4, %5, %cst {dimension_numbers = #tpu.dot_dimension_numbers<[1], [0], [0], [1], [0, 0, 1, 1], [], []>} : vector<16x32xbf16>, vector<32x96xbf16>, vector<16x96xf32> -> vector<16x96xf32>
    %7 = arith.addf %3, %6 : vector<16x96xf32>
    %c0_6 = arith.constant 0 : index
    %c0_7 = arith.constant 0 : index
    %8 = vector.load %arg7[%c0_6, %c0_7] : memref<16x96xf32, #tpu.memory_space<vmem>>, vector<16x96xf32>
    tpu.vector_store %arg7[%c0_6, %c0_7], %7 {strides = array<i32>} : memref<16x96xf32, #tpu.memory_space<vmem>>, vector<16x96xf32>,
    %c0_i32_8 = arith.constant 0 : i32
    %9 = arith.cmpi eq, %arg2, %c0_i32_8 : i32
    %10 = arith.extui %9 : i1 to i32
    %c0_i32_9 = arith.constant 0 : i32
    %11 = arith.cmpi ne, %10, %c0_i32_9 : i32
    scf.if %11 {
      %c0_10 = arith.constant 0 : index
      %c0_11 = arith.constant 0 : index
      %12 = vector.load %arg7[%c0_10, %c0_11] : memref<16x96xf32, #tpu.memory_space<vmem>>, vector<16x96xf32>
      %c0_12 = arith.constant 0 : index
      %c0_13 = arith.constant 0 : index
      %13 = vector.load %arg5[%c0_12, %c0_13] : memref<1x96xf32, #tpu.memory_space<vmem>>, vector<1x96xf32>
      %14 = vector.broadcast %13 : vector<1x96xf32> to vector<16x96xf32>
      %15 = arith.addf %12, %14 : vector<16x96xf32>
      %c0_14 = arith.constant 0 : index
      %c0_15 = arith.constant 0 : index
      %16 = vector.load %arg6[%c0_14, %c0_15] : memref<16x96xf32, #tpu.memory_space<vmem>>, vector<16x96xf32>
      tpu.vector_store %arg6[%c0_14, %c0_15], %15 {strides = array<i32>} : memref<16x96xf32, #tpu.memory_space<vmem>>, vector<16x96xf32>,
    } else {
    }
    return
  }
  func.func @transform_0(%arg0: i32, %arg1: i32, %arg2: i32) -> (i32, i32) {
    %c0_i32 = arith.constant 0 : i32
    return %arg0, %arg2 : i32, i32
  }
  func.func @transform_1(%arg0: i32, %arg1: i32, %arg2: i32) -> (i32, i32) {
    %c0_i32 = arith.constant 0 : i32
    return %arg2, %arg1 : i32, i32
  }
  func.func @transform_2(%arg0: i32, %arg1: i32, %arg2: i32) -> (i32, i32) {
    %c0_i32 = arith.constant 0 : i32
    %c0_i32_0 = arith.constant 0 : i32
    return %c0_i32, %arg1 : i32, i32
  }
  func.func @transform_3(%arg0: i32, %arg1: i32, %arg2: i32) -> (i32, i32) {
    %c0_i32 = arith.constant 0 : i32
    return %arg0, %arg1 : i32, i32
  }
}

</mosaic_0001>

<bundles_post_ra>
// kernel: tpu_custom_call.1
= control target key start
LH: loop header
LB: loop body
LE: loop exit
PB: predicated region body
PF: predicated region fallthrough
CT: control target
= control target key end

     0   :  { %8 = vsyncpa [#allocation4], 0  ;;  %s334_s0 = inlined_call_operand.hbm [shape: bf16[16,32], index: 0, kind: input, shape index: {}]   ;;  %s335_s1 = inlined_call_operand.hbm [shape: bf16[32,96], index: 1, kind: input, shape index: {}]   ;;  %s336_s2 = inlined_call_operand.vmem [shape: f32[1,96], index: 2, kind: input, shape index: {}]   ;;  %s337_s3 = inlined_call_operand.hbm [shape: f32[16,96], index: 3, kind: output, shape index: {}]  }
   0x1   :  { %9 = vsyncpa [#allocation7], 0 }
   0x2   :  { %10 = vsyncpa [#allocation5], 0  ;;  %s260_s12 = smov [#allocation3]   ;;  %s188_s16 = scalar_lea.hbm %s334_s0, 128 }
   0x3   :  { %s16_s13 = sshll.u32 %s260_s12, 4  ;;  %p189_p0 = scmp.ne.s32.totalorder %s334_s0, %s188_s16  ;;  %s17_s13 = int_to_ptr.vmem [resolvable:$true] %s16_s13 }
   0x4   :  { %p192_p1 = scmp.lt.u32.totalorder %s188_s16, %s334_s0 }
   0x6   :  { %p194_p2 = pnand %p192_p1, %p189_p0 }
   0x8   :  { %197 = shalt.err (!%p194_p2)
}
   0x9   :  { %s198_s21 = scalar_lea.vmem %s17_s13, 128  ;;  %p203_p4 = scmp.lt.s32.totalorder %s17_s13, %s17_s13 }
   0xa   :  { %p199_p3 = scmp.ne.s32.totalorder %s17_s13, %s198_s21  ;;  %p204_p5 = scmp.lt.s32.totalorder %s198_s21, %s198_s21 }
   0xc   :  { %p205_p6 = por %p204_p5, %p203_p4 }
   0xe   :  { %p206_p7 = pnand %p205_p6, %p199_p3 }
  0x10   :  { %209 = shalt.err (!%p206_p7)
}
  0x11   :  { %s261_s22 = smov 64   ;;  %s262_s23 = smov 4  }
  0x12   :  { %22 = dma.hbm_to_vmem [thread:$0]  %s334_s0, 128, %s17_s13, [#allocation4], %s261_s22, %s261_s22, %s262_s23  }
  0x13   :  { %s263_s26 = smov [#allocation6]   ;;  %s210_s30 = scalar_lea.hbm %s335_s1, 256 }
  0x14   :  { %s28_s27 = sshll.u32 %s263_s26, 4  ;;  %p211_p8 = scmp.ne.s32.totalorder %s335_s1, %s210_s30  ;;  %s29_s27 = int_to_ptr.vmem [resolvable:$true] %s28_s27 }
  0x15   :  { %p214_p9 = scmp.lt.u32.totalorder %s210_s30, %s335_s1 }
  0x17   :  { %p216_p10 = pnand %p214_p9, %p211_p8 }
  0x19   :  { %219 = shalt.err (!%p216_p10)
}
  0x1a   :  { %s220_s8 = scalar_lea.vmem %s29_s27, 256  ;;  %p225_p12 = scmp.lt.s32.totalorder %s29_s27, %s29_s27 }
  0x1b   :  { %p221_p11 = scmp.ne.s32.totalorder %s29_s27, %s220_s8  ;;  %p226_p13 = scmp.lt.s32.totalorder %s220_s8, %s220_s8 }
  0x1d   :  { %p227_p0 = por %p226_p13, %p225_p12 }
  0x1f   :  { %p228_p1 = pnand %p227_p0, %p221_p11 }
  0x21   :  { %231 = shalt.err (!%p228_p1)
}
  0x22   :  { %34 = dma.hbm_to_vmem [thread:$0]  %s335_s1, 256, %s29_s27, [#allocation7], %s261_s22, %s261_s22, %s262_s23  }
  0x23   :  { %254 = dma.done.wait [#allocation4], 128  }
  0x24   :  { %255 = vsyncadd [#allocation4], 4294967168 }
  0x25   :  { %256 = dma.done.wait [#allocation7], 256  }
  0x26   :  { %257 = vsyncadd [#allocation7], 4294967040  ;;  %vm48_vm0 = vcmask 785408   ;;  %v264_v0 = vmov 0.0   ;;  %vm265_vm1 = vmmov 0   ;;  %v185_v1 = vld [vmem:[#allocation6] sm:$0xff]  }
  0x27   :  { %49 = vst.msk [vmem:[#allocation2] sm:$0xff] %vm48_vm0, %v264_v0  ;;  %50 = vst.msk [vmem:[#allocation2 + $0x8] sm:$0xff] %vm48_vm0, %v264_v0  ;;  %168 = vmatprep.subr.bf16.mxu0 %v264_v0  ;;  %172 = vmatprep.mubr.msk.bf16.mxu0 %vm265_vm1, %v264_v0  ;;  %v186_v2 = vld [vmem:[#allocation6 + $0x8] sm:$0xff]   ;;  %v187_v3 = vld [vmem:[#allocation3] sm:$0xff]   ;;  %vm76_vm2 = vcmask 261120   ;;  %s266_s11 = smov [#allocation8]  }
  0x28   :  { %169 = vmatpush3.bf16.msra.mxu0 %v185_v1  ;;  %v164_v12 = vld [vmem:[%s336_s2] ss:$0 sm:$0xff]  ;;  %s147_s12 = sshll.u32 %s266_s11, 4  ;;  %s148_s12 = int_to_ptr.vmem [resolvable:$true] %s147_s12 }
  0x29   :  { %170 = vmatprep.subr.bf16.mxu0 %v264_v0  ;;  %s232_s13 = scalar_lea.vmem %s148_s12, 256  ;;  %p237_p3 = scmp.lt.s32.totalorder %s148_s12, %s148_s12 }
  0x2a   :  { %p233_p2 = scmp.ne.s32.totalorder %s148_s12, %s232_s13  ;;  %p238_p4 = scmp.lt.s32.totalorder %s232_s13, %s232_s13 }
  0x2c   :  { %171 = vmatpush3.bf16.msra.mxu0 %v186_v2  ;;  %p239_p5 = por %p238_p4, %p237_p3 }
  0x2e   :  { %v51_v4 = vld [vmem:[#allocation2] sm:$0xff]  ;;  %v52_v6 = vld [vmem:[#allocation2 + $0x8] sm:$0xff]  ;;  %p240_p6 = pnand %p239_p5, %p233_p2 }
  0x2f   :  { %173 = vmatmul.mubr.msk.bf16.vlgmr.msra.gmra.mrb[0].mxu0 %vm76_vm2, %v187_v3 }
 0x102   :  { %v114_v5 = vpop.f32.mrb[0].mxu0 }
 0x103   :  { %v121_v7 = vadd.f32 %v114_v5, %v51_v4  ;;  %v174_v8 = vpop.f32.mrb[1].mxu0 }
 0x104   :  { %v117_v9 = vpop.f32.mrb[2].mxu0 }
 0x105   :  { %124 = vst.msk [vmem:[#allocation2] sm:$0xff] %vm48_vm0, %v121_v7  ;;  %v122_v10 = vadd.f32 %v117_v9, %v52_v6  ;;  %v175_v11 = vpop.f32.mrb[3].mxu0 }
 0x107   :  { %125 = vst.msk [vmem:[#allocation2 + $0x8] sm:$0xff] %vm48_vm0, %v122_v10 }
 0x10c   :  { %v129_v13 = vld [vmem:[#allocation2] sm:$0xff] }
 0x10d   :  { %v138_v14 = vadd.f32 %v164_v12, %v129_v13 }
 0x10e   :  { %v130_v15 = vld [vmem:[#allocation2 + $0x8] sm:$0xff] }
 0x10f   :  { %v139_v16 = vadd.f32 %v164_v12, %v130_v15  ;;  %140 = vst.msk [vmem:[#allocation8] sm:$0xff] %vm48_vm0, %v138_v14 }
 0x111   :  { %141 = vst.msk [vmem:[#allocation8 + $0x8] sm:$0xff] %vm48_vm0, %v139_v16 }
 0x112   :  { %243 = shalt.err (!%p240_p6)
}
 0x113   :  { %s244_s15 = scalar_lea.hbm %s337_s3, 256 }
 0x114   :  { %p245_p7 = scmp.ne.s32.totalorder %s337_s3, %s244_s15  ;;  %p248_p8 = scmp.lt.u32.totalorder %s244_s15, %s337_s3 }
 0x116   :  { %p250_p9 = pnand %p248_p8, %p245_p7 }
 0x118   :  { %253 = shalt.err (!%p250_p9)
}
 0x119   :  { %s267_s20 = smov 128   ;;  %s268_s21 = smov 8  }
 0x11a   :  { %153 = dma.vmem_to_hbm [thread:$0]  %s148_s12, 256, %s337_s3, [#allocation5], %s267_s20, %s267_s20, %s268_s21  }
 0x11b   :  { %258 = dma.done.wait [#allocation5], 256  }
 0x11c   :  { %259 = vsyncadd [#allocation5], 4294967040 }
 0x11d   :  { %157 = vsyncpa [#allocation4], 1 }
 0x11e   :  { %158 = vsyncpa [#allocation7], 1 }
 0x11f   :  { %159 = vsyncpa [#allocation5], 1 }

</bundles_post_ra>
